<compile_context>
chip_gen: v5e
topology: v5e:2x2
jax: 0.10.0
libtpu: 0.0.40
codegen_flags: <defaults>
</compile_context>

<pallas_src>
import math
import functools

import jax
import jax.numpy as jnp
import numpy as np
from jax import lax
from jax.experimental import pallas as pl
from jax.experimental.pallas import tpu as pltpu


def _smln_kernel(x_ref, gamma_ref, beta_ref, o_ref, *, eps):
    # One grid step == one (batch, token-tile) slab.
    x = x_ref[0].astype(jnp.float32)            # (tn, D)
    gamma = gamma_ref[0].astype(jnp.float32)    # (1, D)
    beta = beta_ref[0].astype(jnp.float32)      # (1, D)

    D = x.shape[-1]
    inv_d = 1.0 / D

    # One-pass biased statistics over the feature dim (matches nn.LayerNorm, eps inside rsqrt).
    mean = jnp.sum(x, axis=-1, keepdims=True) * inv_d           # (tn, 1)
    ex2 = jnp.sum(x * x, axis=-1, keepdims=True) * inv_d        # (tn, 1)
    var = ex2 - mean * mean
    x_hat = (x - mean) * lax.rsqrt(var + eps)                   # (tn, D)

    o_ref[0] = (x_hat * (1.0 + gamma) + beta).astype(o_ref.dtype)


def _choose_token_tile(n_tokens, d, itemsize, vmem_budget_bytes=24 << 20):
    """Largest token tile (multiple of 8, divisor of N) whose double-buffered
    in+out footprint fits the budget; falls back to the full slab."""
    # 2 buffers x (input + output) x tn x D x itemsize <= budget
    max_rows = max(8, vmem_budget_bytes // (4 * d * itemsize))
    target = int(min(1024, max_rows))
    if n_tokens <= target:
        return n_tokens
    start = target - (target % 8)
    for tn in range(start, 7, -8):
        if n_tokens % tn == 0:
            return tn
    return n_tokens  # no aligned divisor found; use the whole slab


def self_modulated_layer_norm(x, cond, wg, bg, wb, bb, *, eps=1e-3, lr_mul=1.0):
    """x: (B, N, D); cond: (B, ...) flattened to (B, D).

    wg, wb: (D, D) EqualLinear weights (out_dim, in_dim).  bg, bb: (D,) biases.
    """
    B, N, D = x.shape
    cond2 = cond.reshape(B, -1).astype(jnp.float32)
    assert cond2.shape == (B, D), f"cond flattens to {cond2.shape}, expected {(B, D)}"

    # ---- gamma/beta: one batched matmul outside the kernel (EqualLinear semantics) ----
    scale = lr_mul / math.sqrt(D)                              # fold into cond (scalar)
    w_cat = jnp.concatenate([wg, wb], axis=0).astype(jnp.float32)   # (2D, D)
    b_cat = jnp.concatenate([bg, bb], axis=0).astype(jnp.float32) * lr_mul  # (2D,)
    gb = (cond2 * scale) @ w_cat.T + b_cat                     # (B, 2D)
    gamma = gb[:, :D].reshape(B, 1, D)
    beta = gb[:, D:].reshape(B, 1, D)

    # ---- token-dimension tiling ----
    itemsize = jnp.dtype(x.dtype).itemsize
    tn = _choose_token_tile(N, D, itemsize)
    n_tiles = N // tn
    assert n_tiles * tn == N

    # Scoped-VMEM limit with headroom; kept under the v7x 64 MiB physical ceiling.
    buf_bytes = 2 * 2 * tn * D * itemsize + 2 * 2 * D * 4
    vmem_limit = int(min(48 << 20, max(16 << 20, buf_bytes + (4 << 20))))

    kernel = functools.partial(_smln_kernel, eps=eps)

    return pl.pallas_call(
        kernel,
        out_shape=jax.ShapeDtypeStruct((B, N, D), x.dtype),
        grid_spec=pltpu.PrefetchScalarGridSpec(
            num_scalar_prefetch=0,
            grid=(B, n_tiles),
            in_specs=[
                pl.BlockSpec((1, tn, D), lambda b, t: (b, t, 0)),   # x tile
                pl.BlockSpec((1, 1, D), lambda b, t: (b, 0, 0)),    # gamma row
                pl.BlockSpec((1, 1, D), lambda b, t: (b, 0, 0)),    # beta row
            ],
            out_specs=pl.BlockSpec((1, tn, D), lambda b, t: (b, t, 0)),
        ),
        compiler_params=pltpu.CompilerParams(
            dimension_semantics=("parallel", "parallel"),
            vmem_limit_bytes=vmem_limit,
        ),
    )(x, gamma, beta)


def _reference(x, cond, wg, bg, wb, bb, *, eps=1e-3, lr_mul=1.0):
    B, N, D = x.shape
    scale = (1.0 / math.sqrt(D)) * lr_mul
    c = cond.reshape(B, -1)
    gamma = (c @ (wg * scale).T + bg * lr_mul)[:, None, :]
    beta = (c @ (wb * scale).T + bb * lr_mul)[:, None, :]
    mean = jnp.mean(x, axis=-1, keepdims=True)
    var = jnp.mean((x - mean) ** 2, axis=-1, keepdims=True)
    x_hat = (x - mean) / jnp.sqrt(var + eps)
    return x_hat * (1.0 + gamma) + beta


if __name__ == "__main__":
    B, N, D = 2, 8, 32   # batch, tokens, hidden dim

    key = jax.random.PRNGKey(0)
    kx, kc, kwg, kwb = jax.random.split(key, 4)

    x = jax.random.normal(kx, (B, N, D), dtype=jnp.float32)
    cond = jax.random.normal(kc, (B, D), dtype=jnp.float32)

    # EqualLinear init: weight = randn(out_dim, in_dim) / lr_mul, bias = zeros
    lr_mul = 1.0
    wg = jax.random.normal(kwg, (D, D), dtype=jnp.float32) / lr_mul
    wb = jax.random.normal(kwb, (D, D), dtype=jnp.float32) / lr_mul
    bg = jnp.zeros((D,), dtype=jnp.float32)
    bb = jnp.zeros((D,), dtype=jnp.float32)

    out = self_modulated_layer_norm(x, cond, wg, bg, wb, bb, lr_mul=lr_mul)
    out = jax.block_until_ready(out)

    ref = _reference(x, cond, wg, bg, wb, bb, lr_mul=lr_mul)
    np.testing.assert_allclose(np.asarray(out), np.asarray(ref), rtol=1e-5, atol=1e-5)

    print("KERNEL_OK")
</pallas_src>

<mosaic_0001>
module attributes {stable_mosaic.version = 11 : i64} {
  func.func @_smln_kernel(%arg0: i32, %arg1: i32, %arg2: memref<1x8x32xf32, #tpu.memory_space<vmem>>, %arg3: memref<1x1x32xf32, #tpu.memory_space<vmem>>, %arg4: memref<1x1x32xf32, #tpu.memory_space<vmem>>, %arg5: memref<1x8x32xf32, #tpu.memory_space<vmem>>) attributes {dimension_semantics = [#tpu.dimension_semantics<parallel>, #tpu.dimension_semantics<parallel>], iteration_bounds = array<i64: 2, 1>, scalar_prefetch = 0 : i64, scratch_operands = 0 : i64, tpu.core_type = #tpu.core_type<tc>, window_params = [{transform_indices = @transform_0, window_bounds = array<i64: 1, 8, 32>}, {transform_indices = @transform_1, window_bounds = array<i64: 1, 1, 32>}, {transform_indices = @transform_2, window_bounds = array<i64: 1, 1, 32>}, {transform_indices = @transform_3, window_bounds = array<i64: 1, 8, 32>}]} {
    %c0 = arith.constant 0 : index
    %c0_0 = arith.constant 0 : index
    %c0_1 = arith.constant 0 : index
    %0 = vector.load %arg2[%c0, %c0_0, %c0_1] : memref<1x8x32xf32, #tpu.memory_space<vmem>>, vector<1x8x32xf32>
    %1 = vector.shape_cast %0 : vector<1x8x32xf32> to vector<8x32xf32>
    %c0_2 = arith.constant 0 : index
    %c0_3 = arith.constant 0 : index
    %c0_4 = arith.constant 0 : index
    %2 = vector.load %arg3[%c0_2, %c0_3, %c0_4] : memref<1x1x32xf32, #tpu.memory_space<vmem>>, vector<1x1x32xf32>
    %3 = vector.shape_cast %2 : vector<1x1x32xf32> to vector<1x32xf32>
    %c0_5 = arith.constant 0 : index
    %c0_6 = arith.constant 0 : index
    %c0_7 = arith.constant 0 : index
    %4 = vector.load %arg4[%c0_5, %c0_6, %c0_7] : memref<1x1x32xf32, #tpu.memory_space<vmem>>, vector<1x1x32xf32>
    %5 = vector.shape_cast %4 : vector<1x1x32xf32> to vector<1x32xf32>
    %cst = arith.constant dense<0.000000e+00> : vector<8xf32>
    %6 = vector.multi_reduction <add>, %1, %cst [1] : vector<8x32xf32> to vector<8xf32>
    %7 = vector.shape_cast %6 : vector<8xf32> to vector<8x1xf32>
    %cst_8 = arith.constant 3.125000e-02 : f32
    %8 = vector.broadcast %cst_8 : f32 to vector<8x1xf32>
    %9 = arith.mulf %7, %8 : vector<8x1xf32>
    %10 = arith.mulf %1, %1 : vector<8x32xf32>
    %cst_9 = arith.constant dense<0.000000e+00> : vector<8xf32>
    %11 = vector.multi_reduction <add>, %10, %cst_9 [1] : vector<8x32xf32> to vector<8xf32>
    %12 = vector.shape_cast %11 : vector<8xf32> to vector<8x1xf32>
    %cst_10 = arith.constant 3.125000e-02 : f32
    %13 = vector.broadcast %cst_10 : f32 to vector<8x1xf32>
    %14 = arith.mulf %12, %13 : vector<8x1xf32>
    %15 = arith.mulf %9, %9 : vector<8x1xf32>
    %16 = arith.subf %14, %15 : vector<8x1xf32>
    %17 = vector.broadcast %9 : vector<8x1xf32> to vector<8x32xf32>
    %18 = arith.subf %1, %17 : vector<8x32xf32>
    %cst_11 = arith.constant 1.000000e-03 : f32
    %19 = vector.broadcast %cst_11 : f32 to vector<8x1xf32>
    %20 = arith.addf %16, %19 : vector<8x1xf32>
    %21 = math.rsqrt %20 : vector<8x1xf32>
    %22 = vector.broadcast %21 : vector<8x1xf32> to vector<8x32xf32>
    %23 = arith.mulf %18, %22 : vector<8x32xf32>
    %cst_12 = arith.constant 1.000000e+00 : f32
    %24 = vector.broadcast %cst_12 : f32 to vector<1x32xf32>
    %25 = arith.addf %24, %3 : vector<1x32xf32>
    %26 = vector.broadcast %25 : vector<1x32xf32> to vector<8x32xf32>
    %27 = arith.mulf %23, %26 : vector<8x32xf32>
    %28 = vector.broadcast %5 : vector<1x32xf32> to vector<8x32xf32>
    %29 = arith.addf %27, %28 : vector<8x32xf32>
    %c0_13 = arith.constant 0 : index
    %c0_14 = arith.constant 0 : index
    %c0_15 = arith.constant 0 : index
    %30 = vector.load %arg5[%c0_13, %c0_14, %c0_15] : memref<1x8x32xf32, #tpu.memory_space<vmem>>, vector<1x8x32xf32>
    %31 = vector.shape_cast %30 : vector<1x8x32xf32> to vector<8x32xf32>
    %32 = vector.shape_cast %29 : vector<8x32xf32> to vector<1x8x32xf32>
    tpu.vector_store %arg5[%c0_13, %c0_14, %c0_15], %32 {strides = array<i32>} : memref<1x8x32xf32, #tpu.memory_space<vmem>>, vector<1x8x32xf32>,
    return
  }
  func.func @transform_0(%arg0: i32, %arg1: i32) -> (i32, i32, i32) {
    %c0_i32 = arith.constant 0 : i32
    %c0_i32_0 = arith.constant 0 : i32
    return %arg0, %arg1, %c0_i32 : i32, i32, i32
  }
  func.func @transform_1(%arg0: i32, %arg1: i32) -> (i32, i32, i32) {
    %c0_i32 = arith.constant 0 : i32
    %c0_i32_0 = arith.constant 0 : i32
    %c0_i32_1 = arith.constant 0 : i32
    return %arg0, %c0_i32, %c0_i32_0 : i32, i32, i32
  }
  func.func @transform_2(%arg0: i32, %arg1: i32) -> (i32, i32, i32) {
    %c0_i32 = arith.constant 0 : i32
    %c0_i32_0 = arith.constant 0 : i32
    %c0_i32_1 = arith.constant 0 : i32
    return %arg0, %c0_i32, %c0_i32_0 : i32, i32, i32
  }
  func.func @transform_3(%arg0: i32, %arg1: i32) -> (i32, i32, i32) {
    %c0_i32 = arith.constant 0 : i32
    %c0_i32_0 = arith.constant 0 : i32
    return %arg0, %arg1, %c0_i32 : i32, i32, i32
  }
}

</mosaic_0001>

<bundles_post_ra>
// kernel: tpu_custom_call.1
= control target key start
LH: loop header
LB: loop body
LE: loop exit
PB: predicated region body
PF: predicated region fallthrough
CT: control target
= control target key end

     0   :  { %s891_s0 = inlined_call_operand.hbm [shape: f32[2,8,32], index: 0, kind: input, shape index: {}]   ;;  %s892_s1 = inlined_call_operand.hbm [shape: f32[2,1,32], index: 1, kind: input, shape index: {}]   ;;  %s893_s2 = inlined_call_operand.hbm [shape: f32[2,1,32], index: 2, kind: input, shape index: {}]   ;;  %s894_s3 = inlined_call_operand.hbm [shape: f32[2,8,32], index: 3, kind: output, shape index: {}]  }
   0x1   :  { %897 = sst [smem:[#allocation15_spill]] %s892_s1 }
   0x2   :  { %8 = vsyncpa [#allocation3], 0 }
   0x3   :  { %10 = vsyncpa [#allocation3 + $0x1], 0 }
   0x4   :  { %11 = vsyncpa [#allocation6], 0 }
   0x5   :  { %13 = vsyncpa [#allocation6 + $0x1], 0 }
   0x6   :  { %14 = vsyncpa [#allocation4], 0 }
   0x7   :  { %16 = vsyncpa [#allocation4 + $0x1], 0  ;;  %s728_s12 = smov 0   ;;  %s730_s13 = smov 0  }
   0x8   :  { %s732_s14 = smov 0   ;;  %s734_s15 = smov 0  }
   0x9   :  { %s736_s16 = smov 0   ;;  %s738_s17 = smov 0  }
   0xa LB: > { %898 = sst [smem:[#allocation12_spill]] %s694_s14  ;;  %s759_s18 = sadd.s32 4294967295, %s706_s17   ;;  %s706_s17 = sphi %s738_s17, %s22_s17   ;;  %s702_s16 = sphi %s736_s16, %s914_s16   ;;  %s698_s15 = sphi %s734_s15, %s913_s15   ;;  %s694_s14 = sphi %s732_s14, %s909_s14   ;;  %s690_s13 = sphi %s730_s13, %s912_s13   ;;  %s686_s12 = sphi %s728_s12, %s911_s12  }
   0xb   : > { %s443_s19 = sadd.s32 4294967294, %s706_s17   ;;  %s34_s20 = sadd.s32 1, %s702_s16 }
   0xc   : > { %s43_s21 = sadd.s32 1, %s694_s14  ;;  %p36_p0 = scmp.ge.s32.totalorder %s34_s20, 2 }
   0xd   : > { %p50_p1 = scmp.ne.s32.totalorder %s694_s14, %s690_s13  ;;  %p51_p2 = scmp.eq.s32.totalorder %s706_s17, 0 }
   0xe   : > { %p56_p3 = scmp.ne.s32.totalorder %s690_s13, %s686_s12  ;;  %s916_s20 = smov (%p36_p0, %s34_s20), 0 }
   0xf   : > { %899 = sst [smem:[#allocation13_spill]] %s916_s20  ;;  %p771_p4 = por %p51_p2, %p50_p1 }
  0x10   : > { %p57_p5 = scmp.eq.s32.totalorder %s759_s18, 0  ;;  %s38_s23 = ssub.s32 %s702_s16, %s916_s20 }
  0x11   : > { %p134_p6 = scmp.eq.s32.totalorder %s759_s18, 1  ;;  %p41_p7 = scmp.eq.s32.totalorder %s38_s23, 0 }
  0x12   : > { %p779_p8 = por %p57_p5, %p56_p3  ;;  %p140_p10 = scmp.eq.s32.totalorder %s443_s19, 1 }
  0x13   : > { %p783_p9 = por %p134_p6, %p50_p1  ;;  %p445_p12 = scmp.ge.s32.totalorder %s706_s17, 2 }
  0x14   : > { %s788_s26 = scalar_select %p41_p7, %s694_s14, %s43_s21  }
  0x15   : > { %p790_p11 = por %p140_p10, %p56_p3  ;;  %p477_p13 = scmp.lt.s32.totalorder %s706_s17, 2 }
  0x16   : > { %903 = sst [smem:[#allocation14_spill]] %s788_s26  ;;  %s160_s28 = sand.u32 1, %s694_s14  }
  0x17   : > { %s180_s29 = sand.u32 1, %s706_s17   ;;  %p800_p0 = pnand %p477_p13, %p771_p4 }
  0x18   : > { %s906_s1 = sld [smem:[#allocation15_spill]]  ;;  %s183_s7 = scalar_lea.vmem [#allocation5], %s160_s28 }
  0x19   : > { %s190_s8 = sshll.u32 %s183_s7, 4  ;;  %s181_s10 = scalar_lea.sflag [#allocation6], %s180_s29  ;;  %s191_s8 = int_to_ptr.vmem [resolvable:$true] %s190_s8 }
  0x1a   : > { %p448_p1 = scmp.ge.s32.totalorder %s706_s17, 1  ;;  %p212_p2 = scmp.lt.s32.totalorder %s706_s17, 3 }
  0x1b   : > { %s446_s19 = sshll.u32 %s160_s28, 3  ;;  %s447_s21 = sshll.u32 %s702_s16, 3 }
  0x1c   : > { %p812_p3 = pnand %p448_p1, %p212_p2  ;;  %s169_s4 = scalar_lea.hbm %s891_s0, %s447_s21 }
  0x1d   : > { %s171_s5 = sshll.u32 %s169_s4, 4  ;;  %s161_s29 = scalar_lea.sflag [#allocation3], %s160_s28  ;;  %s172_s5 = int_to_ptr.hbm [resolvable:$true] %s171_s5 }
  0x1e   : > { %s186_s6 = scalar_lea.hbm %s906_s1, %s702_s16  ;;  %s203_s1 = scalar_lea.hbm %s893_s2, %s702_s16 }
  0x1f   : > { %s188_s9 = sshll.u32 %s186_s6, 4  ;;  %s164_s6 = scalar_lea.vmem [#allocation2], %s446_s19  ;;  %s189_s9 = int_to_ptr.hbm [resolvable:$true] %s188_s9 }
  0x20   : > { %469 = dma.hbm_to_vmem [thread:$0]  (!%p800_p0), %s189_s9, 16, %s191_s8, %s181_s10  }
  0x21   : > { %s173_s7 = sshll.u32 %s164_s6, 4  ;;  %s205_s20 = sshll.u32 %s203_s1, 4  ;;  %s174_s7 = int_to_ptr.vmem [resolvable:$true] %s173_s7  ;;  %s206_s20 = int_to_ptr.hbm [resolvable:$true] %s205_s20 }
  0x22   : > { %466 = dma.hbm_to_vmem [thread:$0]  (!%p800_p0), %s172_s5, 128, %s174_s7, %s161_s29  }
  0x23   : > { %s200_s26 = scalar_lea.vmem [#allocation7], %s160_s28  ;;  %216 = sbr.rel (%p812_p3) target bundleno = 203 (0xcb), region = 32 }
  0x24   : > { %s207_s14 = sshll.u32 %s200_s26, 4  ;;  %s831_s19 = sand.u32 (!%p812_p3), 1, %s690_s13   ;;  %s208_s14 = int_to_ptr.vmem [resolvable:$true] %s207_s14 }
  0x25   : > { %472 = dma.hbm_to_vmem [thread:$0]  (!%p800_p0), %s206_s20, 16, %s208_s14, %s181_s10  }
  0x26   : > { %s449_s21 = sshll.u32 (!%p812_p3), %s831_s19, 3  ;;  %s219_s22 = scalar_lea.sflag (!%p812_p3), [#allocation3], %s831_s19 }
  0x27   : > { %s222_s1 = scalar_lea.vmem (!%p812_p3), [#allocation2], %s449_s21 }
  0x28   : > { %673 = dma.done.wait (%p779_p8), %s219_s22, 128  }
  0x29   : > { %675 = vsyncadd (%p779_p8), %s219_s22, 4294967168  ;;  %s228_s14 = sand.u32 1, %s759_s18   ;;  %s231_s26 = scalar_lea.vmem [#allocation5], %s831_s19 }
  0x2a   : > { %s229_s20 = scalar_lea.sflag [#allocation6], %s228_s14 }
  0x2b   : > { %677 = dma.done.wait (%p779_p8), %s229_s20, 32  }
  0x2c   : > { %679 = vsyncadd (%p779_p8), %s229_s20, 4294967264  ;;  %vm275_vm0 = vcmask 261120   ;;  %v272_v0 = vld [vmem:[%s222_s1] sm:$0xff]  ;;  %s240_s28 = scalar_lea.vmem [#allocation7], %s831_s19  ;;  %s452_s18 = sshll.u32 %s698_s15, 3 }
  0x2d   : > { %v276_v1 = vsel %vm275_vm0, %v272_v0, 0.0  ;;  %v280_v2 = vmul.f32 %v272_v0, %v272_v0  ;;  %v273_v13 = vld [vmem:[%s231_s26] sm:$0x1]  ;;  %s322_s10 = scalar_lea.hbm %s894_s3, %s452_s18  ;;  %s271_s11 = scalar_lea.vmem [#allocation8], %s449_s21 }
  0x2e   : > { %277 = vadd.xlane.f32.xlu0 %v276_v1  ;;  %v300_v16 = vadd.f32 1.0, %v273_v13  ;;  %v527_v23 = vld [vmem:[%s240_s28] ss:$0 sm:$0xff]  ;;  %s324_s23 = sshll.u32 %s271_s11, 4  ;;  %s326_s4 = sshll.u32 %s322_s10, 4  ;;  %s325_s23 = int_to_ptr.vmem [resolvable:$true] %s324_s23  ;;  %s327_s4 = int_to_ptr.hbm [resolvable:$true] %s326_s4 }
  0x2f   : > { %v281_v3 = vsel %vm275_vm0, %v280_v2, 0.0  ;;  %s311_s15 = scalar_lea.sflag [#allocation4], %s831_s19  ;;  %s634_s5 = sshra.s32 %s327_s4, 4  ;;  %s635_s5 = int_to_ptr.hbm [resolvable:$true] %s634_s5 }
  0x30   : > { %v302_v20 = vperm.slane %v300_v16, 0  ;;  %s636_s6 = scalar_lea.hbm %s635_s5, 8  ;;  %s640_s8 = scalar_lea.hbm %s894_s3, 16 }
  0x31   : > { %p637_p4 = scmp.ne.s32.totalorder %s635_s5, %s636_s6  ;;  %p641_p7 = scmp.lt.s32.totalorder %s635_s5, %s894_s3 }
  0x32   : > { %p642_p8 = scmp.lt.s32.totalorder %s640_s8, %s636_s6 }
  0x33   : > { %p638_p5 = pnand %p637_p4, %p783_p9 }
  0x34   : > { %p643_p10 = por %p642_p8, %p641_p7 }
  0x35   : > { %p639_p6 = pneg %p638_p5 }
  0x36   : > { %282 = vadd.xlane.f32.xlu0 %v281_v3 }
  0x37   : > { %p644_p13 = pnand %p643_p10, %p639_p6 }
  0xa1   : > { %v278_v4 = vpop.xlane.xlu0 %277 }
  0xa2   : > { %v279_v5 = vmul.f32 0.03125, %v278_v4 }
  0xa4   : > { %v285_v7 = vmul.f32 %v279_v5, %v279_v5  ;;  %v287_v19 = vsub.f32 %v272_v0, %v279_v5 }
  0xa9   : > { %v283_v6 = vpop.xlane.xlu0 %282 }
  0xaa   : > { %v284_v8 = vmul.f32 0.03125, %v283_v6 }
  0xac   : > { %v286_v9 = vsub.f32 %v284_v8, %v285_v7 }
  0xae   : > { %v288_v10 = vadd.f32 0.001, %v286_v9 }
  0xb0   : > { %528 = vrsqrt.f32 %v288_v10  ;;  %vm295_vm2 = vweird.f32 %v288_v10 }
  0xb6   : > { %v529_v11 = vpop.eup %528 }
  0xb7   : > { %v290_v12 = vmul.f32 %v529_v11, %v288_v10  ;;  %vm296_vm1 = vweird.f32 %v529_v11 }
  0xb8   : > { %vm297_vm3 = vmor %vm295_vm2, %vm296_vm1 }
  0xb9   : > { %v291_v14 = vmul.f32 %v529_v11, %v290_v12 }
  0xbb   : > { %v292_v15 = vmul.f32 0.5, %v291_v14 }
  0xbd   : > { %v293_v17 = vsub.f32 1.5, %v292_v15 }
  0xbf   : > { %v294_v18 = vmul.f32 %v529_v11, %v293_v17 }
  0xc1   : > { %v298_v21 = vsel %vm297_vm3, %v529_v11, %v294_v18 }
  0xc2   : > { %v299_v22 = vmul.f32 %v298_v21, %v287_v19 }
  0xc4   : > { %v304_v24 = vmul.f32 %v302_v20, %v299_v22 }
  0xc6   : > { %v308_v25 = vadd.f32 %v527_v23, %v304_v24 }
  0xc8   : > { %309 = vst.msk [vmem:[%s271_s11] sm:$0xff] %vm275_vm0, %v308_v25 }
  0xc9   : > { %647 = shalt.err (!%p644_p13)
}
  0xca   : > { %461 = dma.vmem_to_hbm [thread:$0]  (%p783_p9), %s325_s23, 128, %s327_s4, %s311_s15  }
  0xcb PF: > { %s338_s19 = sand.u32 1, %s686_s12   ;;  %p474_p0 = pnand %p445_p12, %p790_p11 }
  0xcc   : > { %s339_s22 = scalar_lea.sflag [#allocation4], %s338_s19 }
  0xcd   : > { %p475_p1 = pneg %p474_p0 }
  0xcf   : > { %681 = dma.done.wait (%p475_p1), %s339_s22, 128  }
  0xd0   : > { %683 = vsyncadd (%p475_p1), %s339_s22, 4294967168  ;;  %s22_s17 = sadd.s32 1, %s706_s17   ;;  %s908_s1 = sld [smem:[#allocation12_spill]] }
  0xd1   : > { %p19_p2 = scmp.ge.s32.totalorder %s22_s17, 4   ;;  %s909_s14 = sld [smem:[#allocation14_spill]] }
  0xd2   : > { %s910_s25 = sld [smem:[#allocation13_spill]]  ;;  %s911_s12 = smov %s690_s13 }
  0xd3   : > { %s913_s15 = smov %s702_s16 }
  0xd4   :  { %21 = sbr.rel (!%p19_p2) target bundleno = 10 (0xa), region = 101 }
  0xd6   : > { %s912_s13 = smov %s908_s1 }
  0xd8   : > { %s914_s16 = smov %s910_s25 }
  0xd9   :  { %345 = vsyncpa [#allocation3], 1 }
  0xda   :  { %347 = vsyncpa [#allocation3 + $0x1], 1 }
  0xdb   :  { %348 = vsyncpa [#allocation6], 1 }
  0xdc   :  { %350 = vsyncpa [#allocation6 + $0x1], 1 }
  0xdd   :  { %351 = vsyncpa [#allocation4], 1 }
  0xde   :  { %353 = vsyncpa [#allocation4 + $0x1], 1 }

</bundles_post_ra>
